<compile_context>
chip_gen: v6e
topology: v6e:2x2x1
jax: 0.10.0
libtpu: 0.0.40
codegen_flags: <defaults>
</compile_context>

<pallas_src>
import functools

import jax
import jax.numpy as jnp
from jax.experimental import pallas as pl
from jax.experimental.pallas import tpu as pltpu


LANES = 128
SUBLANES = 8
DEFAULT_BLOCK_ROWS = 1024          # (1024, 128) f32 block = 512 KiB; 2x-buffered
                                   # stays far under v5e's 16 MiB scoped VMEM.


def _round_up(a, b):
    return (a + b - 1) // b * b


def _partial_sum_kernel(x_ref, o_ref, *, total_rows, block_rows, need_mask):
    """Per-block partial sum, folded to one (8, 128) f32 vreg.

    x_ref: (block_rows, 128) VMEM tile in the input's native dtype
    o_ref: (1, 8, 128) f32 partial-sum output block for this grid step
    """
    x = x_ref[...].astype(jnp.float32)

    if need_mask:
        # Mask rows past the end of the array (partial last block: the
        # out-of-bounds region of the VMEM buffer is unspecified).
        row0 = pl.program_id(0) * block_rows
        rows = jax.lax.broadcasted_iota(jnp.int32, (block_rows, LANES), 0) + row0
        x = jnp.where(rows < total_rows, x, 0.0)

    # (block_rows, 128) -> (block_rows//8, 8, 128); sum over the leading axis is
    # a pure-VPU elementwise add of block_rows//8 vregs (no cross-lane XLU work
    # in the hot loop). The single cross-lane reduce happens once, outside.
    partial = x.reshape(block_rows // SUBLANES, SUBLANES, LANES).sum(axis=0)
    o_ref[...] = partial.reshape(1, SUBLANES, LANES)


def loss_forward(x_fake, reg=1.0, transform=lambda x: x):
    """Pallas equivalent of Loss.forward: reg * transform(x_fake).mean()."""
    x = transform(x_fake)
    n_real = x.size
    flat = jnp.ravel(x)                         # native dtype; reshape is free

    # Pad only if the element count isn't a multiple of one (8, 128) vreg tile
    # (static Python check -> no op at all for typical NCHW power-of-two sizes).
    tile_elems = SUBLANES * LANES
    padded = _round_up(max(n_real, tile_elems), tile_elems)
    if padded != n_real:
        # TODO(synk): this rare path costs one extra pass over the data.
        flat = jnp.pad(flat, (0, padded - n_real))

    x2d = flat.reshape(-1, LANES)               # (R, 128), R % 8 == 0
    total_rows = x2d.shape[0]
    block_rows = min(DEFAULT_BLOCK_ROWS, total_rows)
    n_blocks = pl.cdiv(total_rows, block_rows)
    need_mask = (total_rows % block_rows) != 0

    out_bytes = n_blocks * SUBLANES * LANES * 4
    partials = pl.pallas_call(
        functools.partial(
            _partial_sum_kernel,
            total_rows=total_rows,
            block_rows=block_rows,
            need_mask=need_mask,
        ),
        out_shape=jax.ShapeDtypeStruct((n_blocks, SUBLANES, LANES), jnp.float32),
        grid_spec=pltpu.PrefetchScalarGridSpec(
            num_scalar_prefetch=0,
            grid=(n_blocks,),
            in_specs=[pl.BlockSpec((block_rows, LANES), lambda i: (i, 0))],
            out_specs=pl.BlockSpec((1, SUBLANES, LANES), lambda i: (i, 0, 0)),
        ),
        compiler_params=pltpu.CompilerParams(
            dimension_semantics=("parallel",),
        ),
        cost_estimate=pl.CostEstimate(
            flops=int(n_real),
            transcendentals=0,
            bytes_accessed=int(x2d.size * x2d.dtype.itemsize + out_bytes),
        ),
    )(x2d)

    # Tiny final combine (n_blocks * 8 * 128 f32 elements) + scaling in plain JAX.
    scale = jnp.float32(reg) / jnp.float32(n_real)
    return scale * jnp.sum(partials)


if __name__ == "__main__":
    key = jax.random.PRNGKey(0)
    # Small NCHW-style input consistent with a generator output x_fake.
    x_fake = jax.random.normal(key, (2, 4, 16, 16), dtype=jnp.float32)

    reg = 1.0
    result = loss_forward(x_fake, reg=reg)
    result = jax.block_until_ready(result)

    # Reference check (plain JAX).
    ref = reg * jnp.mean(x_fake)
    assert jnp.allclose(result, ref, rtol=1e-5, atol=1e-6), (result, ref)

    print("KERNEL_OK")
</pallas_src>

<mosaic_0001>
module attributes {stable_mosaic.version = 11 : i64} {
  func.func @_partial_sum_kernel(%arg0: i32, %arg1: memref<16x128xf32, #tpu.memory_space<vmem>>, %arg2: memref<1x8x128xf32, #tpu.memory_space<vmem>>) attributes {dimension_semantics = [#tpu.dimension_semantics<parallel>], iteration_bounds = array<i64: 1>, scalar_prefetch = 0 : i64, scratch_operands = 0 : i64, tpu.core_type = #tpu.core_type<tc>, window_params = [{transform_indices = @transform_0, window_bounds = array<i64: 16, 128>}, {transform_indices = @transform_1, window_bounds = array<i64: 1, 8, 128>}]} {
    %c0 = arith.constant 0 : index
    %c0_0 = arith.constant 0 : index
    %0 = vector.load %arg1[%c0, %c0_0] : memref<16x128xf32, #tpu.memory_space<vmem>>, vector<16x128xf32>
    %1 = vector.shape_cast %0 : vector<16x128xf32> to vector<2x8x128xf32>
    %cst = arith.constant dense<0.000000e+00> : vector<8x128xf32>
    %2 = vector.multi_reduction <add>, %1, %cst [0] : vector<2x8x128xf32> to vector<8x128xf32>
    %3 = vector.shape_cast %2 : vector<8x128xf32> to vector<1x8x128xf32>
    %c0_1 = arith.constant 0 : index
    %c0_2 = arith.constant 0 : index
    %c0_3 = arith.constant 0 : index
    %4 = vector.load %arg2[%c0_1, %c0_2, %c0_3] : memref<1x8x128xf32, #tpu.memory_space<vmem>>, vector<1x8x128xf32>
    tpu.vector_store %arg2[%c0_1, %c0_2, %c0_3], %3 {strides = array<i32>} : memref<1x8x128xf32, #tpu.memory_space<vmem>>, vector<1x8x128xf32>,
    return
  }
  func.func @transform_0(%arg0: i32) -> (i32, i32) {
    %c0_i32 = arith.constant 0 : i32
    %c0_i32_0 = arith.constant 0 : i32
    return %arg0, %c0_i32 : i32, i32
  }
  func.func @transform_1(%arg0: i32) -> (i32, i32, i32) {
    %c0_i32 = arith.constant 0 : i32
    %c0_i32_0 = arith.constant 0 : i32
    %c0_i32_1 = arith.constant 0 : i32
    return %arg0, %c0_i32, %c0_i32_0 : i32, i32, i32
  }
}

</mosaic_0001>

<bundles_post_ra>
// kernel: tpu_custom_call.1
= control target key start
LH: loop header
LB: loop body
LE: loop exit
PB: predicated region body
PF: predicated region fallthrough
CT: control target
= control target key end

     0   :  { %6 = vsyncpa [#allocation3], 0  ;;  %s110_s0 = inlined_call_operand.hbm [shape: f32[16,128], index: 0, kind: input, shape index: {}]   ;;  %s111_s1 = inlined_call_operand.hbm [shape: f32[1,8,128], index: 1, kind: output, shape index: {}]  }
   0x1   :  { %7 = vsyncpa [#allocation4], 0  ;;  %s90_s6 = smov [#allocation2]  }
   0x2   :  { %s13_s7 = sshll.u32 %s90_s6, 4  ;;  %s14_s7 = int_to_ptr.vmem [resolvable:$true] %s13_s7 }
   0x3   :  { %s54_s8 = scalar_lea.vmem %s14_s7, 256  ;;  %p59_p1 = scmp.lt.s32.totalorder %s14_s7, %s14_s7 }
   0x4   :  { %p55_p0 = scmp.ne.s32.totalorder %s14_s7, %s54_s8  ;;  %p60_p2 = scmp.lt.s32.totalorder %s54_s8, %s54_s8 }
   0x6   :  { %p61_p3 = por %p60_p2, %p59_p1 }
   0x8   :  { %p62_p4 = pnand %p61_p3, %p55_p0 }
   0xa   :  { %65 = shalt.err (!%p62_p4)
}
   0xb   :  { %s91_s9 = smov 128   ;;  %s92_s10 = smov 8  }
   0xc   :  { %19 = dma.hbm_to_vmem [thread:$0]  %s110_s0, 256, %s14_s7, [#allocation3], %s91_s9, %s91_s9, %s92_s10  }
   0xd   :  { %86 = dma.done.wait [#allocation3], 256  }
   0xe   :  { %87 = vsyncadd [#allocation3], 4294967040  ;;  %s93_s13 = smov [#allocation5]   ;;  %v23_v0 = vld [vmem:[#allocation2] sm:$0xff]  ;;  %v24_v1 = vld [vmem:[#allocation2 + $0x8] sm:$0xff] }
   0xf   :  { %s33_s14 = sshll.u32 %s93_s13, 4  ;;  %v25_v2 = vadd.f32 %v24_v1, %v23_v0  ;;  %s34_s14 = int_to_ptr.vmem [resolvable:$true] %s33_s14 }
  0x10   :  { %s66_s15 = scalar_lea.vmem %s34_s14, 128  ;;  %p71_p6 = scmp.lt.s32.totalorder %s34_s14, %s34_s14 }
  0x11   :  { %26 = vst [vmem:[#allocation5] sm:$0xff] %v25_v2  ;;  %p67_p5 = scmp.ne.s32.totalorder %s34_s14, %s66_s15  ;;  %p72_p7 = scmp.lt.s32.totalorder %s66_s15, %s66_s15 }
  0x13   :  { %p73_p8 = por %p72_p7, %p71_p6 }
  0x15   :  { %p74_p9 = pnand %p73_p8, %p67_p5 }
  0x17   :  { %77 = shalt.err (!%p74_p9)
}
  0x18   :  { %36 = dma.vmem_to_hbm [thread:$0]  %s34_s14, 128, %s111_s1, [#allocation4]  }
  0x19   :  { %88 = dma.done.wait [#allocation4], 128  }
  0x1a   :  { %89 = vsyncadd [#allocation4], 4294967168 }
  0x1b   :  { %40 = vsyncpa [#allocation3], 1 }
  0x1c   :  { %41 = vsyncpa [#allocation4], 1 }

</bundles_post_ra>
